<compile_context>
chip_gen: v5e
topology: v5e:2x2
jax: 0.10.0
libtpu: 0.0.40
codegen_flags: <defaults>
</compile_context>

<pallas_src>
import functools

import jax
import jax.numpy as jnp
from jax.experimental import pallas as pl
from jax.experimental.pallas import tpu as pltpu

MAX_LOGSTD = 10.0

TM = 128            # row tile of A       (grid axis 0, "parallel")
TK = 128            # reduction tile of A (grid axis 1, "arbitrary", last)
LANE = 128          # feature dims padded to multiples of this
VMEM_LIMIT = 32 * 1024 * 1024   # modest, safe on v5e/v6e/v7x; tiles are tiny


def _round_up(v, m):
    return ((v + m - 1) // m) * m


def _pad2(x, rows, cols):
    return jnp.pad(x, ((0, rows - x.shape[0]), (0, cols - x.shape[1])))


def _compiler_params():
    return pltpu.CompilerParams(
        dimension_semantics=("parallel", "arbitrary"),
        vmem_limit_bytes=VMEM_LIMIT,
    )


# ----------------------------- kernels -----------------------------

def _gcn_layer_kernel(a_ref, h_ref, w_ref, b_ref, o_ref, acc_ref, *,
                      relu, pre_transform):
    """One GCN layer: out = act(A @ H @ W + b), tiled over (row_tile, k_tile).

    pre_transform=True  (d_in > d_out):  acc += A_ik @ (H_k @ W)
    pre_transform=False (d_in <= d_out): acc += A_ik @ H_k ; apply @W at finalize
    """
    k = pl.program_id(1)

    @pl.when(k == 0)
    def _():
        acc_ref[...] = jnp.zeros_like(acc_ref)

    if pre_transform:
        # TODO(synk): H_k @ W is recomputed once per row tile; for very large graphs
        # precompute HW once in a separate row-tiled kernel instead.
        hw = jnp.dot(h_ref[...], w_ref[...],
                     preferred_element_type=jnp.float32).astype(a_ref.dtype)
        acc_ref[...] += jnp.dot(a_ref[...], hw, preferred_element_type=jnp.float32)
    else:
        acc_ref[...] += jnp.dot(a_ref[...], h_ref[...],
                                preferred_element_type=jnp.float32)

    @pl.when(k == pl.num_programs(1) - 1)
    def _():
        acc = acc_ref[...]
        if not pre_transform:
            acc = jnp.dot(acc.astype(w_ref.dtype), w_ref[...],
                          preferred_element_type=jnp.float32)
        out = acc + b_ref[...]            # bias / activation in f32
        if relu:
            out = jnp.maximum(out, 0.0)
        o_ref[...] = out.astype(o_ref.dtype)


def _gvae_heads_kernel(a_ref, h_ref, w_ref, b_ref, eps_ref, o_ref, acc_ref, *,
                       out_pad):
    """Fused mu|logstd heads + clamp + reparametrize.

    w_ref packs [Wmu | Wls] -> one pair of matmuls instead of four.
    Output is one lane-dense slab [TM, 3*out_pad] = [z | mu | logstd].
    """
    k = pl.program_id(1)

    @pl.when(k == 0)
    def _():
        acc_ref[...] = jnp.zeros_like(acc_ref)

    acc_ref[...] += jnp.dot(a_ref[...], h_ref[...],
                            preferred_element_type=jnp.float32)

    @pl.when(k == pl.num_programs(1) - 1)
    def _():
        ah = acc_ref[...].astype(w_ref.dtype)
        heads = jnp.dot(ah, w_ref[...], preferred_element_type=jnp.float32)
        heads = heads + b_ref[...]                       # f32
        mu = heads[:, :out_pad]
        logstd = jnp.minimum(heads[:, out_pad:], MAX_LOGSTD)
        z = mu + eps_ref[...] * jnp.exp(logstd)          # reparametrize in f32
        o_ref[...] = jnp.concatenate([z, mu, logstd], axis=-1)


# ------------------------- pallas_call wrappers -------------------------

def _gcn_layer(a, h, w, b, *, relu, out_dtype):
    n = a.shape[0]
    d_in, d_out = w.shape
    pre = d_in > d_out                      # shape-conditional matmul association
    acc_w = d_out if pre else d_in
    grid = (n // TM, n // TK)
    flops = 2 * n * n * acc_w + 2 * n * d_in * d_out * (grid[0] if pre else 1)
    bytes_accessed = (n * n * 2 + n * d_in * 2 + d_in * d_out * 2
                      + d_out * 4 + n * d_out * 2)
    kernel = functools.partial(_gcn_layer_kernel, relu=relu, pre_transform=pre)
    return pl.pallas_call(
        kernel,
        out_shape=jax.ShapeDtypeStruct((n, d_out), out_dtype),
        grid_spec=pltpu.PrefetchScalarGridSpec(
            num_scalar_prefetch=0,
            grid=grid,
            in_specs=[
                pl.BlockSpec((TM, TK), lambda i, k: (i, k)),        # A tile
                pl.BlockSpec((TK, d_in), lambda i, k: (k, 0)),      # H tile
                pl.BlockSpec((d_in, d_out), lambda i, k: (0, 0)),   # W  (resident)
                pl.BlockSpec((1, d_out), lambda i, k: (0, 0)),      # b  (resident)
            ],
            out_specs=pl.BlockSpec((TM, d_out), lambda i, k: (i, 0)),
            scratch_shapes=[pltpu.VMEM((TM, acc_w), jnp.float32)],
        ),
        compiler_params=_compiler_params(),
        cost_estimate=pl.CostEstimate(flops=int(flops), transcendentals=0,
                                      bytes_accessed=int(bytes_accessed)),
    )(a, h, w, b)


def _gvae_heads(a, h2, w_heads, b_heads, eps, out_pad):
    n = a.shape[0]
    hid2 = h2.shape[1]
    grid = (n // TM, n // TK)
    flops = 2 * n * n * hid2 + 2 * n * hid2 * (2 * out_pad) + 6 * n * out_pad
    bytes_accessed = (n * n * 2 + n * hid2 * 2 + hid2 * 2 * out_pad * 2
                      + 2 * out_pad * 4 + n * out_pad * 4 + n * 3 * out_pad * 4)
    kernel = functools.partial(_gvae_heads_kernel, out_pad=out_pad)
    return pl.pallas_call(
        kernel,
        out_shape=jax.ShapeDtypeStruct((n, 3 * out_pad), jnp.float32),
        grid_spec=pltpu.PrefetchScalarGridSpec(
            num_scalar_prefetch=0,
            grid=grid,
            in_specs=[
                pl.BlockSpec((TM, TK), lambda i, k: (i, k)),               # A tile
                pl.BlockSpec((TK, hid2), lambda i, k: (k, 0)),             # H2 tile
                pl.BlockSpec((hid2, 2 * out_pad), lambda i, k: (0, 0)),    # [Wmu|Wls]
                pl.BlockSpec((1, 2 * out_pad), lambda i, k: (0, 0)),       # [bmu|bls]
                pl.BlockSpec((TM, out_pad), lambda i, k: (i, 0)),          # eps tile
            ],
            out_specs=pl.BlockSpec((TM, 3 * out_pad), lambda i, k: (i, 0)),
            scratch_shapes=[pltpu.VMEM((TM, hid2), jnp.float32)],
        ),
        compiler_params=_compiler_params(),
        cost_estimate=pl.CostEstimate(flops=int(flops),
                                      transcendentals=int(n * out_pad),
                                      bytes_accessed=int(bytes_accessed)),
    )(a, h2, w_heads, b_heads, eps)


@jax.jit
def gvae_forward(a_norm, x, params, eps):
    """GVAEPaperAutoEncoder.forward: returns (z, mu, logstd)."""
    n, in_dims = x.shape
    out_dims = eps.shape[1]
    hid1 = params["w1"].shape[1]
    hid2 = params["w2"].shape[1]

    n_p = _round_up(n, max(TM, TK))
    in_p = _round_up(in_dims, LANE)
    h1_p = _round_up(hid1, LANE)
    h2_p = _round_up(hid2, LANE)
    out_p = _round_up(out_dims, LANE)

    # bf16 matmul operands (MXU-native on v5e/v6e/v7x), zero-padded to lane multiples.
    a_bf = _pad2(a_norm, n_p, n_p).astype(jnp.bfloat16)
    x_bf = _pad2(x, n_p, in_p).astype(jnp.bfloat16)
    w1 = _pad2(params["w1"], in_p, h1_p).astype(jnp.bfloat16)
    b1 = _pad2(params["b1"], 1, h1_p)                      # f32
    w2 = _pad2(params["w2"], h1_p, h2_p).astype(jnp.bfloat16)
    b2 = _pad2(params["b2"], 1, h2_p)                      # f32
    # Fused heads: [Wmu | Wls] and [bmu | bls].
    w_heads = jnp.concatenate(
        [_pad2(params["wmu"], h2_p, out_p), _pad2(params["wls"], h2_p, out_p)],
        axis=1).astype(jnp.bfloat16)
    b_heads = jnp.concatenate(
        [_pad2(params["bmu"], 1, out_p), _pad2(params["bls"], 1, out_p)], axis=1)
    eps_p = _pad2(eps, n_p, out_p)                         # f32

    h1 = _gcn_layer(a_bf, x_bf, w1, b1, relu=True, out_dtype=jnp.bfloat16)
    h2 = _gcn_layer(a_bf, h1, w2, b2, relu=True, out_dtype=jnp.bfloat16)
    slab = _gvae_heads(a_bf, h2, w_heads, b_heads, eps_p, out_p)

    z = slab[:n, 0:out_dims]
    mu = slab[:n, out_p:out_p + out_dims]
    logstd = slab[:n, 2 * out_p:2 * out_p + out_dims]
    return z, mu, logstd


# ------------------------------ plain-JAX glue ------------------------------

def make_params(key, in_dims, hid1_dims, hid2_dims, out_dims):
    """Deterministic glorot-ish init of GCN weights + zero biases."""
    ks = jax.random.split(key, 4)

    def glorot(k, fan_in, fan_out):
        lim = jnp.sqrt(6.0 / (fan_in + fan_out))
        return jax.random.uniform(k, (fan_in, fan_out), jnp.float32, -lim, lim)

    return {
        "w1": glorot(ks[0], in_dims, hid1_dims),
        "b1": jnp.zeros((1, hid1_dims), jnp.float32),
        "w2": glorot(ks[1], hid1_dims, hid2_dims),
        "b2": jnp.zeros((1, hid2_dims), jnp.float32),
        "wmu": glorot(ks[2], hid2_dims, out_dims),
        "bmu": jnp.zeros((1, out_dims), jnp.float32),
        "wls": glorot(ks[3], hid2_dims, out_dims),
        "bls": jnp.zeros((1, out_dims), jnp.float32),
    }


def normalized_adjacency(edge_index, num_nodes):
    """Dense symmetric GCN normalization: D^-1/2 (A + I) D^-1/2."""
    src, dst = edge_index
    a = jnp.zeros((num_nodes, num_nodes), jnp.float32)
    a = a.at[src, dst].set(1.0)
    a = a.at[dst, src].set(1.0)                    # symmetrize
    eye = jnp.eye(num_nodes, dtype=jnp.float32)
    a = jnp.where(eye > 0, 1.0, a)                 # dedup self loops, then add I
    deg = jnp.sum(a, axis=1)
    d_inv_sqrt = jnp.where(deg > 0, 1.0 / jnp.sqrt(deg), 0.0)
    return a * d_inv_sqrt[:, None] * d_inv_sqrt[None, :]


def _reference(a, x, params, eps):
    """Pure-JAX f32 reference of the same forward pass."""
    h = jnp.maximum(a @ (x @ params["w1"]) + params["b1"], 0.0)
    h = jnp.maximum(a @ (h @ params["w2"]) + params["b2"], 0.0)
    mu = a @ (h @ params["wmu"]) + params["bmu"]
    ls = jnp.minimum(a @ (h @ params["wls"]) + params["bls"], MAX_LOGSTD)
    z = mu + eps * jnp.exp(ls)
    return z, mu, ls


if __name__ == "__main__":
    # Small, module-consistent shapes.
    N, IN_DIMS, HID1, HID2, OUT = 16, 16, 32, 16, 8

    key = jax.random.PRNGKey(0)
    k_x, k_e, k_p, k_eps = jax.random.split(key, 4)

    x = jax.random.normal(k_x, (N, IN_DIMS), jnp.float32)
    E = 40
    edge_index = jax.random.randint(k_e, (2, E), 0, N)
    a_norm = normalized_adjacency(edge_index, N)
    params = make_params(k_p, IN_DIMS, HID1, HID2, OUT)
    # eps ~ N(0, I): matches torch.randn_like(logstd) semantics (sampled in glue).
    eps = jax.random.normal(k_eps, (N, OUT), jnp.float32)

    z, mu, logstd = gvae_forward(a_norm, x, params, eps)
    jax.block_until_ready((z, mu, logstd))

    z_ref, mu_ref, ls_ref = _reference(a_norm, x, params, eps)
    for got, ref in ((z, z_ref), (mu, mu_ref), (logstd, ls_ref)):
        assert got.shape == ref.shape
        assert bool(jnp.all(jnp.isfinite(got)))
        assert float(jnp.max(jnp.abs(got - ref))) < 0.25  # bf16-matmul tolerance
    assert bool(jnp.all(logstd <= MAX_LOGSTD + 1e-6))
    # TODO(synk): InnerProductDecoder (sigmoid(z @ z.T)), recon_loss and kl_loss are
    # not part of forward(); only the encode + reparametrize path is kernelized.
    print("KERNEL_OK")
</pallas_src>

<mosaic_0001>
module attributes {stable_mosaic.version = 11 : i64} {
  func.func @_gvae_heads_kernel(%arg0: i32, %arg1: i32, %arg2: memref<128x128xbf16, #tpu.memory_space<vmem>>, %arg3: memref<128x128xbf16, #tpu.memory_space<vmem>>, %arg4: memref<128x256xbf16, #tpu.memory_space<vmem>>, %arg5: memref<1x256xf32, #tpu.memory_space<vmem>>, %arg6: memref<128x128xf32, #tpu.memory_space<vmem>>, %arg7: memref<128x384xf32, #tpu.memory_space<vmem>>, %arg8: memref<128x128xf32, #tpu.memory_space<vmem>>) attributes {dimension_semantics = [#tpu.dimension_semantics<parallel>, #tpu.dimension_semantics<arbitrary>], iteration_bounds = array<i64: 1, 1>, scalar_prefetch = 0 : i64, scratch_operands = 1 : i64, tpu.core_type = #tpu.core_type<tc>, window_params = [{transform_indices = @transform_0, window_bounds = array<i64: 128, 128>}, {transform_indices = @transform_1, window_bounds = array<i64: 128, 128>}, {pipeline_mode = #tpu.pipeline_mode<synchronous>, transform_indices = @transform_2, window_bounds = array<i64: 128, 256>}, {pipeline_mode = #tpu.pipeline_mode<synchronous>, transform_indices = @transform_3, window_bounds = array<i64: 1, 256>}, {transform_indices = @transform_4, window_bounds = array<i64: 128, 128>}, {transform_indices = @transform_5, window_bounds = array<i64: 128, 384>}]} {
    %c0_i32 = arith.constant 0 : i32
    %0 = arith.cmpi eq, %arg1, %c0_i32 : i32
    %1 = arith.extui %0 : i1 to i32
    %c0_i32_0 = arith.constant 0 : i32
    %2 = arith.cmpi ne, %1, %c0_i32_0 : i32
    scf.if %2 {
      %cst_10 = arith.constant 0.000000e+00 : f32
      %12 = vector.broadcast %cst_10 : f32 to vector<128x128xf32>
      %c0_11 = arith.constant 0 : index
      %c0_12 = arith.constant 0 : index
      %13 = vector.load %arg8[%c0_11, %c0_12] : memref<128x128xf32, #tpu.memory_space<vmem>>, vector<128x128xf32>
      tpu.vector_store %arg8[%c0_11, %c0_12], %12 {strides = array<i32>} : memref<128x128xf32, #tpu.memory_space<vmem>>, vector<128x128xf32>,
    } else {
    }
    %c0 = arith.constant 0 : index
    %c0_1 = arith.constant 0 : index
    %3 = vector.load %arg8[%c0, %c0_1] : memref<128x128xf32, #tpu.memory_space<vmem>>, vector<128x128xf32>
    %c0_2 = arith.constant 0 : index
    %c0_3 = arith.constant 0 : index
    %4 = vector.load %arg2[%c0_2, %c0_3] : memref<128x128xbf16, #tpu.memory_space<vmem>>, vector<128x128xbf16>
    %c0_4 = arith.constant 0 : index
    %c0_5 = arith.constant 0 : index
    %5 = vector.load %arg3[%c0_4, %c0_5] : memref<128x128xbf16, #tpu.memory_space<vmem>>, vector<128x128xbf16>
    %cst = arith.constant dense<0.000000e+00> : vector<128x128xf32>
    %6 = tpu.matmul %4, %5, %cst {dimension_numbers = #tpu.dot_dimension_numbers<[1], [0], [0], [1], [0, 0, 1, 1], [], []>} : vector<128x128xbf16>, vector<128x128xbf16>, vector<128x128xf32> -> vector<128x128xf32>
    %7 = arith.addf %3, %6 : vector<128x128xf32>
    %c0_6 = arith.constant 0 : index
    %c0_7 = arith.constant 0 : index
    %8 = vector.load %arg8[%c0_6, %c0_7] : memref<128x128xf32, #tpu.memory_space<vmem>>, vector<128x128xf32>
    tpu.vector_store %arg8[%c0_6, %c0_7], %7 {strides = array<i32>} : memref<128x128xf32, #tpu.memory_space<vmem>>, vector<128x128xf32>,
    %c0_i32_8 = arith.constant 0 : i32
    %9 = arith.cmpi eq, %arg1, %c0_i32_8 : i32
    %10 = arith.extui %9 : i1 to i32
    %c0_i32_9 = arith.constant 0 : i32
    %11 = arith.cmpi ne, %10, %c0_i32_9 : i32
    scf.if %11 {
      %c0_10 = arith.constant 0 : index
      %c0_11 = arith.constant 0 : index
      %12 = vector.load %arg8[%c0_10, %c0_11] : memref<128x128xf32, #tpu.memory_space<vmem>>, vector<128x128xf32>
      %13 = arith.truncf %12 : vector<128x128xf32> to vector<128x128xbf16>
      %c0_12 = arith.constant 0 : index
      %c0_13 = arith.constant 0 : index
      %14 = vector.load %arg4[%c0_12, %c0_13] : memref<128x256xbf16, #tpu.memory_space<vmem>>, vector<128x256xbf16>
      %cst_14 = arith.constant dense<0.000000e+00> : vector<128x256xf32>
      %15 = tpu.matmul %13, %14, %cst_14 {dimension_numbers = #tpu.dot_dimension_numbers<[1], [0], [0], [1], [0, 0, 1, 1], [], []>} : vector<128x128xbf16>, vector<128x256xbf16>, vector<128x256xf32> -> vector<128x256xf32>
      %c0_15 = arith.constant 0 : index
      %c0_16 = arith.constant 0 : index
      %16 = vector.load %arg5[%c0_15, %c0_16] : memref<1x256xf32, #tpu.memory_space<vmem>>, vector<1x256xf32>
      %17 = vector.broadcast %16 : vector<1x256xf32> to vector<128x256xf32>
      %18 = arith.addf %15, %17 : vector<128x256xf32>
      %19 = vector.extract_strided_slice %18 {offsets = [0, 0], sizes = [128, 128], strides = [1, 1]} : vector<128x256xf32> to vector<128x128xf32>
      %20 = vector.extract_strided_slice %18 {offsets = [0, 128], sizes = [128, 128], strides = [1, 1]} : vector<128x256xf32> to vector<128x128xf32>
      %cst_17 = arith.constant 1.000000e+01 : f32
      %21 = vector.broadcast %cst_17 : f32 to vector<128x128xf32>
      %22 = arith.minimumf %20, %21 : vector<128x128xf32>
      %c0_18 = arith.constant 0 : index
      %c0_19 = arith.constant 0 : index
      %23 = vector.load %arg6[%c0_18, %c0_19] : memref<128x128xf32, #tpu.memory_space<vmem>>, vector<128x128xf32>
      %24 = math.exp %22 : vector<128x128xf32>
      %25 = arith.mulf %23, %24 : vector<128x128xf32>
      %26 = arith.addf %19, %25 : vector<128x128xf32>
      %27 = tpu.concatenate %26, %19, %22 in 1 : vector<128x128xf32>, vector<128x128xf32>, vector<128x128xf32> -> vector<128x384xf32>
      %c0_20 = arith.constant 0 : index
      %c0_21 = arith.constant 0 : index
      %28 = vector.load %arg7[%c0_20, %c0_21] : memref<128x384xf32, #tpu.memory_space<vmem>>, vector<128x384xf32>
      tpu.vector_store %arg7[%c0_20, %c0_21], %27 {strides = array<i32>} : memref<128x384xf32, #tpu.memory_space<vmem>>, vector<128x384xf32>,
    } else {
    }
    return
  }
  func.func @transform_0(%arg0: i32, %arg1: i32) -> (i32, i32) {
    %c0_i32 = arith.constant 0 : i32
    return %arg0, %arg1 : i32, i32
  }
  func.func @transform_1(%arg0: i32, %arg1: i32) -> (i32, i32) {
    %c0_i32 = arith.constant 0 : i32
    %c0_i32_0 = arith.constant 0 : i32
    return %arg1, %c0_i32 : i32, i32
  }
  func.func @transform_2(%arg0: i32, %arg1: i32) -> (i32, i32) {
    %c0_i32 = arith.constant 0 : i32
    %c0_i32_0 = arith.constant 0 : i32
    %c0_i32_1 = arith.constant 0 : i32
    return %c0_i32, %c0_i32_0 : i32, i32
  }
  func.func @transform_3(%arg0: i32, %arg1: i32) -> (i32, i32) {
    %c0_i32 = arith.constant 0 : i32
    %c0_i32_0 = arith.constant 0 : i32
    %c0_i32_1 = arith.constant 0 : i32
    return %c0_i32, %c0_i32_0 : i32, i32
  }
  func.func @transform_4(%arg0: i32, %arg1: i32) -> (i32, i32) {
    %c0_i32 = arith.constant 0 : i32
    %c0_i32_0 = arith.constant 0 : i32
    return %arg0, %c0_i32 : i32, i32
  }
  func.func @transform_5(%arg0: i32, %arg1: i32) -> (i32, i32) {
    %c0_i32 = arith.constant 0 : i32
    %c0_i32_0 = arith.constant 0 : i32
    return %arg0, %c0_i32 : i32, i32
  }
}

module attributes {stable_mosaic.version = 11 : i64} {
  func.func @_gcn_layer_kernel(%arg0: i32, %arg1: i32, %arg2: memref<128x128xbf16, #tpu.memory_space<vmem>>, %arg3: memref<128x128xbf16, #tpu.memory_space<vmem>>, %arg4: memref<128x128xbf16, #tpu.memory_space<vmem>>, %arg5: memref<1x128xf32, #tpu.memory_space<vmem>>, %arg6: memref<128x128xbf16, #tpu.memory_space<vmem>>, %arg7: memref<128x128xf32, #tpu.memory_space<vmem>>) attributes {dimension_semantics = [#tpu.dimension_semantics<parallel>, #tpu.dimension_semantics<arbitrary>], iteration_bounds = array<i64: 1, 1>, scalar_prefetch = 0 : i64, scratch_operands = 1 : i64, tpu.core_type = #tpu.core_type<tc>, window_params = [{transform_indices = @transform_0, window_bounds = array<i64: 128, 128>}, {transform_indices = @transform_1, window_bounds = array<i64: 128, 128>}, {pipeline_mode = #tpu.pipeline_mode<synchronous>, transform_indices = @transform_2, window_bounds = array<i64: 128, 128>}, {pipeline_mode = #tpu.pipeline_mode<synchronous>, transform_indices = @transform_3, window_bounds = array<i64: 1, 128>}, {transform_indices = @transform_4, window_bounds = array<i64: 128, 128>}]} {
    %c0_i32 = arith.constant 0 : i32
    %0 = arith.cmpi eq, %arg1, %c0_i32 : i32
    %1 = arith.extui %0 : i1 to i32
    %c0_i32_0 = arith.constant 0 : i32
    %2 = arith.cmpi ne, %1, %c0_i32_0 : i32
    scf.if %2 {
      %cst_10 = arith.constant 0.000000e+00 : f32
      %12 = vector.broadcast %cst_10 : f32 to vector<128x128xf32>
      %c0_11 = arith.constant 0 : index
      %c0_12 = arith.constant 0 : index
      %13 = vector.load %arg7[%c0_11, %c0_12] : memref<128x128xf32, #tpu.memory_space<vmem>>, vector<128x128xf32>
      tpu.vector_store %arg7[%c0_11, %c0_12], %12 {strides = array<i32>} : memref<128x128xf32, #tpu.memory_space<vmem>>, vector<128x128xf32>,
    } else {
    }
    %c0 = arith.constant 0 : index
    %c0_1 = arith.constant 0 : index
    %3 = vector.load %arg7[%c0, %c0_1] : memref<128x128xf32, #tpu.memory_space<vmem>>, vector<128x128xf32>
    %c0_2 = arith.constant 0 : index
    %c0_3 = arith.constant 0 : index
    %4 = vector.load %arg2[%c0_2, %c0_3] : memref<128x128xbf16, #tpu.memory_space<vmem>>, vector<128x128xbf16>
    %c0_4 = arith.constant 0 : index
    %c0_5 = arith.constant 0 : index
    %5 = vector.load %arg3[%c0_4, %c0_5] : memref<128x128xbf16, #tpu.memory_space<vmem>>, vector<128x128xbf16>
    %cst = arith.constant dense<0.000000e+00> : vector<128x128xf32>
    %6 = tpu.matmul %4, %5, %cst {dimension_numbers = #tpu.dot_dimension_numbers<[1], [0], [0], [1], [0, 0, 1, 1], [], []>} : vector<128x128xbf16>, vector<128x128xbf16>, vector<128x128xf32> -> vector<128x128xf32>
    %7 = arith.addf %3, %6 : vector<128x128xf32>
    %c0_6 = arith.constant 0 : index
    %c0_7 = arith.constant 0 : index
    %8 = vector.load %arg7[%c0_6, %c0_7] : memref<128x128xf32, #tpu.memory_space<vmem>>, vector<128x128xf32>
    tpu.vector_store %arg7[%c0_6, %c0_7], %7 {strides = array<i32>} : memref<128x128xf32, #tpu.memory_space<vmem>>, vector<128x128xf32>,
    %c0_i32_8 = arith.constant 0 : i32
    %9 = arith.cmpi eq, %arg1, %c0_i32_8 : i32
    %10 = arith.extui %9 : i1 to i32
    %c0_i32_9 = arith.constant 0 : i32
    %11 = arith.cmpi ne, %10, %c0_i32_9 : i32
    scf.if %11 {
      %c0_10 = arith.constant 0 : index
      %c0_11 = arith.constant 0 : index
      %12 = vector.load %arg7[%c0_10, %c0_11] : memref<128x128xf32, #tpu.memory_space<vmem>>, vector<128x128xf32>
      %13 = arith.truncf %12 : vector<128x128xf32> to vector<128x128xbf16>
      %c0_12 = arith.constant 0 : index
      %c0_13 = arith.constant 0 : index
      %14 = vector.load %arg4[%c0_12, %c0_13] : memref<128x128xbf16, #tpu.memory_space<vmem>>, vector<128x128xbf16>
      %cst_14 = arith.constant dense<0.000000e+00> : vector<128x128xf32>
      %15 = tpu.matmul %13, %14, %cst_14 {dimension_numbers = #tpu.dot_dimension_numbers<[1], [0], [0], [1], [0, 0, 1, 1], [], []>} : vector<128x128xbf16>, vector<128x128xbf16>, vector<128x128xf32> -> vector<128x128xf32>
      %c0_15 = arith.constant 0 : index
      %c0_16 = arith.constant 0 : index
      %16 = vector.load %arg5[%c0_15, %c0_16] : memref<1x128xf32, #tpu.memory_space<vmem>>, vector<1x128xf32>
      %17 = vector.broadcast %16 : vector<1x128xf32> to vector<128x128xf32>
      %18 = arith.addf %15, %17 : vector<128x128xf32>
      %cst_17 = arith.constant 0.000000e+00 : f32
      %19 = vector.broadcast %cst_17 : f32 to vector<128x128xf32>
      %20 = arith.maximumf %18, %19 : vector<128x128xf32>
      %21 = arith.truncf %20 : vector<128x128xf32> to vector<128x128xbf16>
      %c0_18 = arith.constant 0 : index
      %c0_19 = arith.constant 0 : index
      %22 = vector.load %arg6[%c0_18, %c0_19] : memref<128x128xbf16, #tpu.memory_space<vmem>>, vector<128x128xbf16>
      tpu.vector_store %arg6[%c0_18, %c0_19], %21 {strides = array<i32>} : memref<128x128xbf16, #tpu.memory_space<vmem>>, vector<128x128xbf16>,
    } else {
    }
    return
  }
  func.func @transform_0(%arg0: i32, %arg1: i32) -> (i32, i32) {
    %c0_i32 = arith.constant 0 : i32
    return %arg0, %arg1 : i32, i32
  }
  func.func @transform_1(%arg0: i32, %arg1: i32) -> (i32, i32) {
    %c0_i32 = arith.constant 0 : i32
    %c0_i32_0 = arith.constant 0 : i32
    return %arg1, %c0_i32 : i32, i32
  }
  func.func @transform_2(%arg0: i32, %arg1: i32) -> (i32, i32) {
    %c0_i32 = arith.constant 0 : i32
    %c0_i32_0 = arith.constant 0 : i32
    %c0_i32_1 = arith.constant 0 : i32
    return %c0_i32, %c0_i32_0 : i32, i32
  }
  func.func @transform_3(%arg0: i32, %arg1: i32) -> (i32, i32) {
    %c0_i32 = arith.constant 0 : i32
    %c0_i32_0 = arith.constant 0 : i32
    %c0_i32_1 = arith.constant 0 : i32
    return %c0_i32, %c0_i32_0 : i32, i32
  }
  func.func @transform_4(%arg0: i32, %arg1: i32) -> (i32, i32) {
    %c0_i32 = arith.constant 0 : i32
    %c0_i32_0 = arith.constant 0 : i32
    return %arg0, %c0_i32 : i32, i32
  }
}

</mosaic_0001>

<bundles_post_ra>
// kernel: gvae_forward.5
= control target key start
LH: loop header
LB: loop body
LE: loop exit
PB: predicated region body
PF: predicated region fallthrough
CT: control target
= control target key end

     0   :  { %s1281_s1 = inlined_call_operand.vmem [shape: bf16[128,128], index: 1, kind: input, shape index: {}]   ;;  %s1282_s0 = inlined_call_operand.vmem [shape: bf16[128,128], index: 0, kind: input, shape index: {}]   ;;  %s1283_s2 = inlined_call_operand.vmem [shape: bf16[128,256], index: 2, kind: input, shape index: {}]   ;;  %s1284_s3 = inlined_call_operand.vmem [shape: f32[1,256], index: 3, kind: input, shape index: {}]   ;;  %s1285_s5 = inlined_call_operand.vmem [shape: f32[128,384], index: 5, kind: output, shape index: {}]   ;;  %s1286_s4 = inlined_call_operand.vmem [shape: f32[128,128], index: 4, kind: input, shape index: {}]  }
   0x1   :  { %v783_v0 = vld [vmem:[%s1281_s1 + $0x38] sm:$0xff]  ;;  %v782_v1 = vld [vmem:[%s1281_s1 + $0x30] sm:$0xff]  ;;  %v781_v2 = vld [vmem:[%s1281_s1 + $0x28] sm:$0xff] }
   0x2   :  { %184 = vmatpush.bf16.msra.mxu0 %v783_v0  ;;  %800 = vmatpush.bf16.msra.mxu3 %v783_v0  ;;  %v780_v3 = vld [vmem:[%s1281_s1 + $0x20] sm:$0xff]  ;;  %v779_v4 = vld [vmem:[%s1281_s1 + $0x18] sm:$0xff]  ;;  %v778_v5 = vld [vmem:[%s1281_s1 + $0x10] sm:$0xff] }
   0x3   :  { %v777_v6 = vld [vmem:[%s1281_s1 + $0x8] sm:$0xff]  ;;  %v776_v7 = vld [vmem:[%s1281_s1] sm:$0xff]  ;;  %v774_v9 = vld [vmem:[%s1282_s0 + $0x30] sm:$0xff] }
   0x4   :  { %v768_v8 = vld [vmem:[%s1282_s0] sm:$0xff]  ;;  %v769_v10 = vld [vmem:[%s1282_s0 + $0x8] sm:$0xff]  ;;  %v775_v11 = vld [vmem:[%s1282_s0 + $0x38] sm:$0xff] }
   0x5   :  { %v770_v12 = vld [vmem:[%s1282_s0 + $0x10] sm:$0xff]  ;;  %v771_v13 = vld [vmem:[%s1282_s0 + $0x18] sm:$0xff]  ;;  %v754_v19 = vld [vmem:[%s1283_s2 + $0x60] sm:$0xf] }
   0x6   :  { %185 = vmatpush.bf16.msra.mxu0 %v782_v1  ;;  %801 = vmatpush.bf16.msra.mxu3 %v782_v1  ;;  %v762_v14 = vld [vmem:[%s1283_s2 + $0x70] sm:$0xf]  ;;  %v799_v15 = vld [vmem:[%s1283_s2 + $0x74] sm:$0xf0]  ;;  %v798_v16 = vld [vmem:[%s1283_s2 + $0x74] sm:$0xf] }
   0x7   :  { %v763_v17 = vor.u32 %v799_v15, %v762_v14  ;;  %v764_v18 = vld [vmem:[%s1283_s2 + $0x78] sm:$0xf0]  ;;  %v797_v20 = vld [vmem:[%s1283_s2 + $0x64] sm:$0xf0]  ;;  %v796_v22 = vld [vmem:[%s1283_s2 + $0x64] sm:$0xf] }
   0x8   :  { %v946_v21 = vor.u32 %v798_v16, %v764_v18  ;;  %v756_v23 = vld [vmem:[%s1283_s2 + $0x68] sm:$0xf0]  ;;  %v755_v24 = vor.u32 %v797_v20, %v754_v19  ;;  %v746_v26 = vld [vmem:[%s1283_s2 + $0x50] sm:$0xf]  ;;  %v795_v27 = vld [vmem:[%s1283_s2 + $0x54] sm:$0xf0] }
   0x9   :  { %394 = vmatpush.bf16.msra.mxu1 %v763_v17  ;;  %v759_v25 = vor.u32 %v796_v22, %v756_v23  ;;  %v794_v28 = vld [vmem:[%s1283_s2 + $0x54] sm:$0xf]  ;;  %v748_v29 = vld [vmem:[%s1283_s2 + $0x58] sm:$0xf0]  ;;  %v747_v30 = vor.u32 %v795_v27, %v746_v26  ;;  %v738_v32 = vld [vmem:[%s1283_s2 + $0x40] sm:$0xf] }
   0xa   :  { %186 = vmatpush.bf16.msra.mxu0 %v781_v2  ;;  %802 = vmatpush.bf16.msra.mxu3 %v781_v2  ;;  %v751_v31 = vor.u32 %v794_v28, %v748_v29  ;;  %v793_v33 = vld [vmem:[%s1283_s2 + $0x44] sm:$0xf0]  ;;  %v792_v34 = vld [vmem:[%s1283_s2 + $0x44] sm:$0xf]  ;;  %v740_v35 = vld [vmem:[%s1283_s2 + $0x48] sm:$0xf0] }
   0xb   :  { %443 = vmatpush.bf16.msra.mxu2 %v946_v21  ;;  %v739_v36 = vor.u32 %v793_v33, %v738_v32  ;;  %v772_v37 = vld [vmem:[%s1282_s0 + $0x20] sm:$0xff]  ;;  %v743_v38 = vor.u32 %v792_v34, %v740_v35  ;;  %v730_v39 = vld [vmem:[%s1283_s2 + $0x30] sm:$0xf]  ;;  %v791_v40 = vld [vmem:[%s1283_s2 + $0x34] sm:$0xf0] }
   0xc   :  { %v790_v41 = vld [vmem:[%s1283_s2 + $0x34] sm:$0xf]  ;;  %v732_v42 = vld [vmem:[%s1283_s2 + $0x38] sm:$0xf0]  ;;  %v731_v43 = vor.u32 %v791_v40, %v730_v39  ;;  %v773_v45 = vld [vmem:[%s1282_s0 + $0x28] sm:$0xff] }
   0xd   :  { %395 = vmatpush.bf16.msra.mxu1 %v755_v24  ;;  %v735_v44 = vor.u32 %v790_v41, %v732_v42  ;;  %v722_v46 = vld [vmem:[%s1283_s2 + $0x20] sm:$0xf]  ;;  %v789_v47 = vld [vmem:[%s1283_s2 + $0x24] sm:$0xf0]  ;;  %v788_v48 = vld [vmem:[%s1283_s2 + $0x24] sm:$0xf] }
   0xe   :  { %187 = vmatpush.bf16.msra.mxu0 %v780_v3  ;;  %803 = vmatpush.bf16.msra.mxu3 %v780_v3  ;;  %v723_v49 = vor.u32 %v789_v47, %v722_v46  ;;  %v724_v50 = vld [vmem:[%s1283_s2 + $0x28] sm:$0xf0]  ;;  %v714_v52 = vld [vmem:[%s1283_s2 + $0x10] sm:$0xf]  ;;  %v787_v53 = vld [vmem:[%s1283_s2 + $0x14] sm:$0xf0] }
   0xf   :  { %444 = vmatpush.bf16.msra.mxu2 %v759_v25  ;;  %v727_v51 = vor.u32 %v788_v48, %v724_v50  ;;  %v786_v54 = vld [vmem:[%s1283_s2 + $0x14] sm:$0xf]  ;;  %v715_v55 = vor.u32 %v787_v53, %v714_v52  ;;  %v716_v56 = vld [vmem:[%s1283_s2 + $0x18] sm:$0xf0]  ;;  %v706_v58 = vld [vmem:[%s1283_s2] sm:$0xf] }
  0x10   :  { %v719_v57 = vor.u32 %v786_v54, %v716_v56  ;;  %v785_v59 = vld [vmem:[%s1283_s2 + $0x4] sm:$0xf0]  ;;  %v784_v60 = vld [vmem:[%s1283_s2 + $0x4] sm:$0xf]  ;;  %v708_v62 = vld [vmem:[%s1283_s2 + $0x8] sm:$0xf0] }
  0x11   :  { %396 = vmatpush.bf16.msra.mxu1 %v747_v30  ;;  %v707_v61 = vor.u32 %v785_v59, %v706_v58  ;;  %v711_v63 = vor.u32 %v784_v60, %v708_v62  ;;  %v508_v40 = vld [vmem:[%s1286_s4] sm:$0xff]  ;;  %v509_v52 = vld [vmem:[%s1286_s4 + $0x8] sm:$0xff] }
  0x12   :  { %188 = vmatpush.bf16.msra.mxu0 %v779_v4  ;;  %804 = vmatpush.bf16.msra.mxu3 %v779_v4 }
  0x13   :  { %445 = vmatpush.bf16.msra.mxu2 %v751_v31 }
  0x15   :  { %397 = vmatpush.bf16.msra.mxu1 %v739_v36 }
  0x16   :  { %189 = vmatpush.bf16.msra.mxu0 %v778_v5  ;;  %805 = vmatpush.bf16.msra.mxu3 %v778_v5 }
  0x17   :  { %446 = vmatpush.bf16.msra.mxu2 %v743_v38 }
  0x19   :  { %398 = vmatpush.bf16.msra.mxu1 %v731_v43 }
  0x1a   :  { %190 = vmatpush.bf16.msra.mxu0 %v777_v6  ;;  %806 = vmatpush.bf16.msra.mxu3 %v777_v6 }
  0x1b   :  { %447 = vmatpush.bf16.msra.mxu2 %v735_v44 }
  0x1d   :  { %399 = vmatpush.bf16.msra.mxu1 %v723_v49 }
  0x1e   :  { %191 = vmatpush.bf16.msra.mxu0 %v776_v7  ;;  %807 = vmatpush.bf16.msra.mxu3 %v776_v7 }
  0x1f   :  { %448 = vmatpush.bf16.msra.mxu2 %v727_v51 }
  0x21   :  { %192 = vmatmul.bf16.vlgmr.msra.gmra.mxu0 %v768_v8  ;;  %222 = vmatmul.bf16.vlgmr.msra.gmra.mxu3 %v774_v9 }
  0x22   :  { %808 = vmatpush.bf16.msrb.mxu3 %v763_v17  ;;  %400 = vmatpush.bf16.msra.mxu1 %v715_v55 }
  0x23   :  { %449 = vmatpush.bf16.msra.mxu2 %v719_v57 }
  0x26   :  { %809 = vmatpush.bf16.msrb.mxu3 %v755_v24  ;;  %401 = vmatpush.bf16.msra.mxu1 %v707_v61  ;;  %v308_v24 = vld [vmem:[%s1284_s3] sm:$0x3] }
  0x27   :  { %450 = vmatpush.bf16.msra.mxu2 %v711_v63  ;;  %v1043_v28 = vperm.slane %v308_v24, 1 }
  0x2a   :  { %810 = vmatpush.bf16.msrb.mxu3 %v747_v30 }
  0x2e   :  { %811 = vmatpush.bf16.msrb.mxu3 %v739_v36 }
  0x31   :  { %197 = vmatmul.bf16.gmra.mxu0 %v769_v10  ;;  %227 = vmatmul.bf16.gmra.mxu3 %v775_v11 }
  0x32   :  { %812 = vmatpush.bf16.msrb.mxu3 %v731_v43 }
  0x36   :  { %813 = vmatpush.bf16.msrb.mxu3 %v723_v49 }
  0x3a   :  { %814 = vmatpush.bf16.msrb.mxu3 %v715_v55 }
  0x3e   :  { %815 = vmatpush.bf16.msrb.mxu3 %v707_v61 }
  0x41   :  { %202 = vmatmul.bf16.gmra.mxu0 %v770_v12 }
  0x42   :  { %816 = vmatpush.bf16.msra.mxu3 %v946_v21 }
  0x46   :  { %817 = vmatpush.bf16.msra.mxu3 %v759_v25  ;;  %v1037_v25 = vperm.slane %v308_v24, 0 }
  0x4a   :  { %818 = vmatpush.bf16.msra.mxu3 %v751_v31 }
  0x4e   :  { %819 = vmatpush.bf16.msra.mxu3 %v743_v38 }
  0x51   :  { %207 = vmatmul.bf16.gmra.mxu0 %v771_v13 }
  0x52   :  { %820 = vmatpush.bf16.msra.mxu3 %v735_v44 }
  0x56   :  { %821 = vmatpush.bf16.msra.mxu3 %v727_v51 }
  0x5a   :  { %822 = vmatpush.bf16.msra.mxu3 %v719_v57 }
  0x5e   :  { %823 = vmatpush.bf16.msra.mxu3 %v711_v63 }
  0x61   :  { %212 = vmatmul.bf16.gmra.mxu0 %v772_v37 }
  0x71   :  { %217 = vmatmul.bf16.gmra.mxu0 %v773_v45 }
  0x9e   :  { %v193_v0 = vpop.f32.mrf.mxu0 }
  0xa4   :  { %v223_v1 = vpop.f32.mrf.mxu3 }
  0xa6   :  { %v195_v2 = vpop.f32.mrf.mxu0 }
  0xa7   :  { %v284_v3 = vpack.c.bf16 %v195_v2, %v193_v0  ;;  %v510_v0 = vld [vmem:[%s1286_s4 + $0x10] sm:$0xff] }
  0xa9   :  { %402 = vmatmul.bf16.vlgmr.msra.gmra.mxu1 %v284_v3  ;;  %451 = vmatmul.bf16.vlgmr.msra.gmra.mxu2 %v284_v3 }
  0xac   :  { %v225_v4 = vpop.f32.mrf.mxu3 }
  0xad   :  { %v290_v5 = vpack.c.bf16 %v225_v4, %v223_v1 }
  0xae   :  { %v198_v6 = vpop.f32.mrf.mxu0 }
  0xaf   :  { %432 = vmatmul.bf16.vlgmr.msrb.gmra.mxu3 %v290_v5 }
  0xb4   :  { %v228_v7 = vpop.f32.mrf.mxu3 }
  0xb6   :  { %v200_v8 = vpop.f32.mrf.mxu0 }
  0xb7   :  { %v285_v9 = vpack.c.bf16 %v200_v8, %v198_v6 }
  0xb9   :  { %407 = vmatmul.bf16.gmra.mxu1 %v285_v9  ;;  %456 = vmatmul.bf16.gmra.mxu2 %v285_v9 }
  0xbc   :  { %v230_v10 = vpop.f32.mrf.mxu3 }
  0xbd   :  { %v291_v11 = vpack.c.bf16 %v230_v10, %v228_v7 }
  0xbe   :  { %v203_v12 = vpop.f32.mrf.mxu0 }
  0xbf   :  { %437 = vmatmul.bf16.gmra.mxu3 %v291_v11 }
  0xc6   :  { %v205_v13 = vpop.f32.mrf.mxu0 }
  0xc7   :  { %v286_v14 = vpack.c.bf16 %v205_v13, %v203_v12  ;;  %v511_v12 = vld [vmem:[%s1286_s4 + $0x18] sm:$0xff] }
  0xc9   :  { %412 = vmatmul.bf16.gmra.mxu1 %v286_v14  ;;  %461 = vmatmul.bf16.gmra.mxu2 %v286_v14 }
  0xce   :  { %v208_v15 = vpop.f32.mrf.mxu0 }
  0xcf   :  { %481 = vmatmul.bf16.vlgmr.msra.gmra.mxu3 %v290_v5 }
  0xd6   :  { %v210_v16 = vpop.f32.mrf.mxu0 }
  0xd7   :  { %v287_v17 = vpack.c.bf16 %v210_v16, %v208_v15 }
  0xd9   :  { %417 = vmatmul.bf16.gmra.mxu1 %v287_v17  ;;  %466 = vmatmul.bf16.gmra.mxu2 %v287_v17 }
  0xde   :  { %v213_v18 = vpop.f32.mrf.mxu0 }
  0xdf   :  { %486 = vmatmul.bf16.gmra.mxu3 %v291_v11 }
  0xe6   :  { %v215_v19 = vpop.f32.mrf.mxu0 }
  0xe7   :  { %v288_v20 = vpack.c.bf16 %v215_v19, %v213_v18 }
  0xe9   :  { %422 = vmatmul.bf16.gmra.mxu1 %v288_v20  ;;  %471 = vmatmul.bf16.gmra.mxu2 %v288_v20 }
  0xee   :  { %v218_v21 = vpop.f32.mrf.mxu0 }
  0xf6   :  { %v220_v22 = vpop.f32.mrf.mxu0 }
  0xf7   :  { %v289_v23 = vpack.c.bf16 %v220_v22, %v218_v21 }
  0xf9   :  { %427 = vmatmul.bf16.gmra.mxu1 %v289_v23  ;;  %476 = vmatmul.bf16.gmra.mxu2 %v289_v23 }
 0x126   :  { %v403_v26 = vpop.f32.mrf.mxu1 }
 0x127   :  { %v404_v27 = vadd.f32 %v403_v26, %v1037_v25  ;;  %v512_v26 = vld [vmem:[%s1286_s4 + $0x20] sm:$0xff] }
 0x129   :  { %589 = vst [vmem:[%s1285_s5 + $0x8] sm:$0xff] %v404_v27 }
 0x12c   :  { %v452_v29 = vpop.f32.mrf.mxu2 }
 0x12d   :  { %v453_v30 = vadd.f32 %v452_v29, %v1043_v28 }
 0x12e   :  { %v405_v31 = vpop.f32.mrf.mxu1 }
 0x12f   :  { %v492_v32 = vmin.f32 %v453_v30, 10.0  ;;  %v406_v33 = vadd.f32 %v405_v31, %v1037_v25 }
 0x131   :  { %v524_v34 = vmul.f32 1.442695, %v492_v32  ;;  %590 = vst [vmem:[%s1285_s5 + $0x10] sm:$0xff] %v492_v32 }
 0x132   :  { %592 = vst [vmem:[%s1285_s5 + $0x20] sm:$0xff] %v406_v33  ;;  %v433_v35 = vpop.f32.mrf.mxu3 }
 0x133   :  { %824 = vpow2.f32 %v524_v34  ;;  %v1054_v36 = vadd.f32 %v433_v35, %v1037_v25 }
 0x134   :  { %v454_v37 = vpop.f32.mrf.mxu2 }
 0x135   :  { %625 = vst [vmem:[%s1285_s5 + $0x128] sm:$0xff] %v1054_v36  ;;  %v455_v38 = vadd.f32 %v454_v37, %v1043_v28 }
 0x136   :  { %v408_v39 = vpop.f32.mrf.mxu1 }
 0x137   :  { %v493_v41 = vmin.f32 %v455_v38, 10.0  ;;  %v409_v42 = vadd.f32 %v408_v39, %v1037_v25  ;;  %v520_v39 = vld [vmem:[%s1286_s4 + $0x60] sm:$0xff] }
 0x139   :  { %v825_v43 = vpop.eup %824  ;;  %v526_v44 = vmul.f32 1.442695, %v493_v41  ;;  %593 = vst [vmem:[%s1285_s5 + $0x28] sm:$0xff] %v493_v41 }
 0x13a   :  { %v556_v45 = vmul.f32 %v825_v43, %v508_v40  ;;  %595 = vst [vmem:[%s1285_s5 + $0x38] sm:$0xff] %v409_v42  ;;  %v435_v46 = vpop.f32.mrf.mxu3 }
 0x13b   :  { %826 = vpow2.f32 %v526_v44  ;;  %v1072_v47 = vadd.f32 %v435_v46, %v1037_v25  ;;  %v513_v44 = vld [vmem:[%s1286_s4 + $0x28] sm:$0xff] }
 0x13c   :  { %v572_v48 = vadd.f32 %v556_v45, %v404_v27  ;;  %v457_v49 = vpop.f32.mrf.mxu2 }
 0x13d   :  { %628 = vst [vmem:[%s1285_s5 + $0x140] sm:$0xff] %v1072_v47  ;;  %v458_v50 = vadd.f32 %v457_v49, %v1043_v28 }
 0x13e   :  { %588 = vst [vmem:[%s1285_s5] sm:$0xff] %v572_v48  ;;  %v410_v51 = vpop.f32.mrf.mxu1 }
 0x13f   :  { %v494_v53 = vmin.f32 %v458_v50, 10.0  ;;  %v411_v54 = vadd.f32 %v410_v51, %v1037_v25 }
 0x141   :  { %v827_v55 = vpop.eup %826  ;;  %v528_v56 = vmul.f32 1.442695, %v494_v53  ;;  %596 = vst [vmem:[%s1285_s5 + $0x40] sm:$0xff] %v494_v53 }
 0x142   :  { %v557_v57 = vmul.f32 %v827_v55, %v509_v52  ;;  %598 = vst [vmem:[%s1285_s5 + $0x50] sm:$0xff] %v411_v54  ;;  %v438_v58 = vpop.f32.mrf.mxu3 }
 0x143   :  { %828 = vpow2.f32 %v528_v56  ;;  %v1093_v59 = vadd.f32 %v438_v58, %v1037_v25  ;;  %v521_v58 = vld [vmem:[%s1286_s4 + $0x68] sm:$0xff] }
 0x144   :  { %v573_v60 = vadd.f32 %v557_v57, %v406_v33  ;;  %v459_v61 = vpop.f32.mrf.mxu2 }
 0x145   :  { %631 = vst [vmem:[%s1285_s5 + $0x158] sm:$0xff] %v1093_v59  ;;  %v460_v62 = vadd.f32 %v459_v61, %v1043_v28 }
 0x146   :  { %591 = vst [vmem:[%s1285_s5 + $0x18] sm:$0xff] %v573_v60  ;;  %v413_v63 = vpop.f32.mrf.mxu1 }
 0x147   :  { %v495_v1 = vmin.f32 %v460_v62, 10.0  ;;  %v414_v2 = vadd.f32 %v413_v63, %v1037_v25  ;;  %v514_v63 = vld [vmem:[%s1286_s4 + $0x30] sm:$0xff] }
 0x149   :  { %v829_v3 = vpop.eup %828  ;;  %v530_v4 = vmul.f32 1.442695, %v495_v1  ;;  %599 = vst [vmem:[%s1285_s5 + $0x58] sm:$0xff] %v495_v1 }
 0x14a   :  { %v558_v5 = vmul.f32 %v829_v3, %v510_v0  ;;  %601 = vst [vmem:[%s1285_s5 + $0x68] sm:$0xff] %v414_v2  ;;  %v440_v6 = vpop.f32.mrf.mxu3 }
 0x14b   :  { %830 = vpow2.f32 %v530_v4  ;;  %v1114_v7 = vadd.f32 %v440_v6, %v1037_v25 }
 0x14c   :  { %v574_v8 = vadd.f32 %v558_v5, %v409_v42  ;;  %v462_v9 = vpop.f32.mrf.mxu2 }
 0x14d   :  { %634 = vst [vmem:[%s1285_s5 + $0x170] sm:$0xff] %v1114_v7  ;;  %v463_v10 = vadd.f32 %v462_v9, %v1043_v28 }
 0x14e   :  { %594 = vst [vmem:[%s1285_s5 + $0x30] sm:$0xff] %v574_v8  ;;  %v415_v11 = vpop.f32.mrf.mxu1 }
 0x14f   :  { %v496_v13 = vmin.f32 %v463_v10, 10.0  ;;  %v416_v14 = vadd.f32 %v415_v11, %v1037_v25 }
 0x151   :  { %v831_v15 = vpop.eup %830  ;;  %v532_v16 = vmul.f32 1.442695, %v496_v13  ;;  %602 = vst [vmem:[%s1285_s5 + $0x70] sm:$0xff] %v496_v13  ;;  %v522_v13 = vld [vmem:[%s1286_s4 + $0x70] sm:$0xff] }
 0x152   :  { %v559_v17 = vmul.f32 %v831_v15, %v511_v12  ;;  %604 = vst [vmem:[%s1285_s5 + $0x80] sm:$0xff] %v416_v14  ;;  %v482_v18 = vpop.f32.mrf.mxu3 }
 0x153   :  { %832 = vpow2.f32 %v532_v16  ;;  %v483_v19 = vadd.f32 %v482_v18, %v1043_v28 }
 0x154   :  { %v575_v20 = vadd.f32 %v559_v17, %v411_v54  ;;  %v464_v21 = vpop.f32.mrf.mxu2  ;;  %v515_v17 = vld [vmem:[%s1286_s4 + $0x38] sm:$0xff] }
 0x155   :  { %v504_v22 = vmin.f32 %v483_v19, 10.0  ;;  %v465_v23 = vadd.f32 %v464_v21, %v1043_v28 }
 0x156   :  { %597 = vst [vmem:[%s1285_s5 + $0x48] sm:$0xff] %v575_v20  ;;  %v418_v24 = vpop.f32.mrf.mxu1 }
 0x157   :  { %v548_v27 = vmul.f32 1.442695, %v504_v22  ;;  %626 = vst [vmem:[%s1285_s5 + $0x130] sm:$0xff] %v504_v22  ;;  %v497_v29 = vmin.f32 %v465_v23, 10.0  ;;  %v419_v30 = vadd.f32 %v418_v24, %v1037_v25 }
 0x159   :  { %v833_v31 = vpop.eup %832  ;;  %834 = vpow2.f32 %v548_v27  ;;  %v534_v32 = vmul.f32 1.442695, %v497_v29  ;;  %605 = vst [vmem:[%s1285_s5 + $0x88] sm:$0xff] %v497_v29 }
 0x15a   :  { %v560_v33 = vmul.f32 %v833_v31, %v512_v26  ;;  %607 = vst [vmem:[%s1285_s5 + $0x98] sm:$0xff] %v419_v30  ;;  %v484_v34 = vpop.f32.mrf.mxu3 }
 0x15b   :  { %836 = vpow2.f32 %v534_v32  ;;  %v485_v35 = vadd.f32 %v484_v34, %v1043_v28 }
 0x15c   :  { %v576_v37 = vadd.f32 %v560_v33, %v414_v2  ;;  %v467_v38 = vpop.f32.mrf.mxu2  ;;  %v516_v33 = vld [vmem:[%s1286_s4 + $0x40] sm:$0xff] }
 0x15d   :  { %v505_v40 = vmin.f32 %v485_v35, 10.0  ;;  %v468_v41 = vadd.f32 %v467_v38, %v1043_v28 }
 0x15e   :  { %600 = vst [vmem:[%s1285_s5 + $0x60] sm:$0xff] %v576_v37  ;;  %v420_v42 = vpop.f32.mrf.mxu1 }
 0x15f   :  { %v835_v43 = vpop.eup %834  ;;  %v550_v45 = vmul.f32 1.442695, %v505_v40  ;;  %629 = vst [vmem:[%s1285_s5 + $0x148] sm:$0xff] %v505_v40  ;;  %v498_v46 = vmin.f32 %v468_v41, 10.0  ;;  %v421_v48 = vadd.f32 %v420_v42, %v1037_v25 }
 0x160   :  { %v568_v49 = vmul.f32 %v835_v43, %v520_v39 }
 0x161   :  { %v837_v50 = vpop.eup %836  ;;  %838 = vpow2.f32 %v550_v45  ;;  %v536_v51 = vmul.f32 1.442695, %v498_v46  ;;  %608 = vst [vmem:[%s1285_s5 + $0xa0] sm:$0xff] %v498_v46 }
 0x162   :  { %v584_v52 = vadd.f32 %v568_v49, %v1054_v36  ;;  %v561_v53 = vmul.f32 %v837_v50, %v513_v44  ;;  %610 = vst [vmem:[%s1285_s5 + $0xb0] sm:$0xff] %v421_v48  ;;  %v487_v54 = vpop.f32.mrf.mxu3 }
 0x163   :  { %840 = vpow2.f32 %v536_v51  ;;  %v488_v55 = vadd.f32 %v487_v54, %v1043_v28 }
 0x164   :  { %624 = vst [vmem:[%s1285_s5 + $0x120] sm:$0xff] %v584_v52  ;;  %v577_v56 = vadd.f32 %v561_v53, %v416_v14  ;;  %v469_v57 = vpop.f32.mrf.mxu2 }
 0x165   :  { %v506_v36 = vmin.f32 %v488_v55, 10.0  ;;  %v470_v60 = vadd.f32 %v469_v57, %v1043_v28 }
 0x166   :  { %603 = vst [vmem:[%s1285_s5 + $0x78] sm:$0xff] %v577_v56  ;;  %v423_v61 = vpop.f32.mrf.mxu1 }
 0x167   :  { %v839_v62 = vpop.eup %838  ;;  %v552_v0 = vmul.f32 1.442695, %v506_v36  ;;  %632 = vst [vmem:[%s1285_s5 + $0x160] sm:$0xff] %v506_v36  ;;  %v499_v1 = vmin.f32 %v470_v60, 10.0  ;;  %v424_v2 = vadd.f32 %v423_v61, %v1037_v25 }
 0x168   :  { %v569_v3 = vmul.f32 %v839_v62, %v521_v58 }
 0x169   :  { %v841_v4 = vpop.eup %840  ;;  %842 = vpow2.f32 %v552_v0  ;;  %v538_v5 = vmul.f32 1.442695, %v499_v1  ;;  %611 = vst [vmem:[%s1285_s5 + $0xb8] sm:$0xff] %v499_v1 }
 0x16a   :  { %v585_v6 = vadd.f32 %v569_v3, %v1072_v47  ;;  %v562_v8 = vmul.f32 %v841_v4, %v514_v63  ;;  %613 = vst [vmem:[%s1285_s5 + $0xc8] sm:$0xff] %v424_v2  ;;  %v489_v9 = vpop.f32.mrf.mxu3 }
 0x16b   :  { %844 = vpow2.f32 %v538_v5  ;;  %v490_v10 = vadd.f32 %v489_v9, %v1043_v28 }
 0x16c   :  { %627 = vst [vmem:[%s1285_s5 + $0x138] sm:$0xff] %v585_v6  ;;  %v578_v11 = vadd.f32 %v562_v8, %v419_v30  ;;  %v472_v12 = vpop.f32.mrf.mxu2  ;;  %v523_v30 = vld [vmem:[%s1286_s4 + $0x78] sm:$0xff] }
 0x16d   :  { %v507_v47 = vmin.f32 %v490_v10, 10.0  ;;  %v473_v14 = vadd.f32 %v472_v12, %v1043_v28 }
 0x16e   :  { %606 = vst [vmem:[%s1285_s5 + $0x90] sm:$0xff] %v578_v11  ;;  %v425_v15 = vpop.f32.mrf.mxu1 }
 0x16f   :  { %v843_v16 = vpop.eup %842  ;;  %v554_v18 = vmul.f32 1.442695, %v507_v47  ;;  %635 = vst [vmem:[%s1285_s5 + $0x178] sm:$0xff] %v507_v47  ;;  %v500_v19 = vmin.f32 %v473_v14, 10.0  ;;  %v426_v20 = vadd.f32 %v425_v15, %v1037_v25 }
 0x170   :  { %v570_v21 = vmul.f32 %v843_v16, %v522_v13 }
 0x171   :  { %v845_v22 = vpop.eup %844  ;;  %846 = vpow2.f32 %v554_v18  ;;  %v540_v23 = vmul.f32 1.442695, %v500_v19  ;;  %614 = vst [vmem:[%s1285_s5 + $0xd0] sm:$0xff] %v500_v19 }
 0x172   :  { %v586_v24 = vadd.f32 %v570_v21, %v1093_v59  ;;  %v563_v26 = vmul.f32 %v845_v22, %v515_v17  ;;  %616 = vst [vmem:[%s1285_s5 + $0xe0] sm:$0xff] %v426_v20 }
 0x173   :  { %848 = vpow2.f32 %v540_v23 }
 0x174   :  { %630 = vst [vmem:[%s1285_s5 + $0x150] sm:$0xff] %v586_v24  ;;  %v579_v27 = vadd.f32 %v563_v26, %v421_v48  ;;  %v474_v29 = vpop.f32.mrf.mxu2 }
 0x175   :  { %v475_v31 = vadd.f32 %v474_v29, %v1043_v28 }
 0x176   :  { %609 = vst [vmem:[%s1285_s5 + $0xa8] sm:$0xff] %v579_v27  ;;  %v428_v59 = vpop.f32.mrf.mxu1 }
 0x177   :  { %v847_v32 = vpop.eup %846  ;;  %v501_v34 = vmin.f32 %v475_v31, 10.0  ;;  %v429_v35 = vadd.f32 %v428_v59, %v1037_v25 }
 0x178   :  { %v571_v37 = vmul.f32 %v847_v32, %v523_v30 }
 0x179   :  { %v849_v38 = vpop.eup %848  ;;  %v542_v39 = vmul.f32 1.442695, %v501_v34  ;;  %617 = vst [vmem:[%s1285_s5 + $0xe8] sm:$0xff] %v501_v34 }
 0x17a   :  { %v587_v40 = vadd.f32 %v571_v37, %v1114_v7  ;;  %v564_v41 = vmul.f32 %v849_v38, %v516_v33  ;;  %619 = vst [vmem:[%s1285_s5 + $0xf8] sm:$0xff] %v429_v35  ;;  %v517_v7 = vld [vmem:[%s1286_s4 + $0x48] sm:$0xff] }
 0x17b   :  { %850 = vpow2.f32 %v542_v39 }
 0x17c   :  { %633 = vst [vmem:[%s1285_s5 + $0x168] sm:$0xff] %v587_v40  ;;  %v580_v42 = vadd.f32 %v564_v41, %v424_v2  ;;  %v477_v43 = vpop.f32.mrf.mxu2 }
 0x17d   :  { %v478_v44 = vadd.f32 %v477_v43, %v1043_v28 }
 0x17e   :  { %612 = vst [vmem:[%s1285_s5 + $0xc0] sm:$0xff] %v580_v42  ;;  %v430_v45 = vpop.f32.mrf.mxu1 }
 0x17f   :  { %v502_v46 = vmin.f32 %v478_v44, 10.0  ;;  %v431_v48 = vadd.f32 %v430_v45, %v1037_v25  ;;  %v518_v25 = vld [vmem:[%s1286_s4 + $0x50] sm:$0xff] }
 0x181   :  { %v851_v49 = vpop.eup %850  ;;  %v544_v50 = vmul.f32 1.442695, %v502_v46  ;;  %620 = vst [vmem:[%s1285_s5 + $0x100] sm:$0xff] %v502_v46 }
 0x182   :  { %v565_v51 = vmul.f32 %v851_v49, %v517_v7  ;;  %622 = vst [vmem:[%s1285_s5 + $0x110] sm:$0xff] %v431_v48 }
 0x183   :  { %852 = vpow2.f32 %v544_v50 }
 0x184   :  { %v581_v52 = vadd.f32 %v565_v51, %v426_v20  ;;  %v479_v53 = vpop.f32.mrf.mxu2 }
 0x185   :  { %v480_v54 = vadd.f32 %v479_v53, %v1043_v28  ;;  %v519_v28 = vld [vmem:[%s1286_s4 + $0x58] sm:$0xff] }
 0x186   :  { %615 = vst [vmem:[%s1285_s5 + $0xd8] sm:$0xff] %v581_v52 }
 0x187   :  { %v503_v55 = vmin.f32 %v480_v54, 10.0 }
 0x189   :  { %v853_v56 = vpop.eup %852  ;;  %v546_v57 = vmul.f32 1.442695, %v503_v55  ;;  %623 = vst [vmem:[%s1285_s5 + $0x118] sm:$0xff] %v503_v55 }
 0x18a   :  { %v566_v58 = vmul.f32 %v853_v56, %v518_v25 }
 0x18b   :  { %854 = vpow2.f32 %v546_v57 }
 0x18c   :  { %v582_v36 = vadd.f32 %v566_v58, %v429_v35 }
 0x18e   :  { %618 = vst [vmem:[%s1285_s5 + $0xf0] sm:$0xff] %v582_v36 }
 0x191   :  { %v855_v60 = vpop.eup %854 }
 0x192   :  { %v567_v61 = vmul.f32 %v855_v60, %v519_v28 }
 0x194   :  { %v583_v62 = vadd.f32 %v567_v61, %v431_v48 }
 0x196   :  { %621 = vst [vmem:[%s1285_s5 + $0x108] sm:$0xff] %v583_v62 }

// kernel: gvae_forward.3
= control target key start
LH: loop header
LB: loop body
LE: loop exit
PB: predicated region body
PF: predicated region fallthrough
CT: control target
= control target key end

     0   :  { %s766_s1 = inlined_call_operand.vmem [shape: bf16[128,128], index: 1, kind: input, shape index: {}]   ;;  %s767_s0 = inlined_call_operand.vmem [shape: bf16[128,128], index: 0, kind: input, shape index: {}]   ;;  %s768_s2 = inlined_call_operand.vmem [shape: bf16[128,128], index: 2, kind: input, shape index: {}]   ;;  %s769_s3 = inlined_call_operand.vmem [shape: f32[1,128], index: 3, kind: input, shape index: {}]   ;;  %s770_s4 = inlined_call_operand.vmem [shape: bf16[128,128], index: 4, kind: output, shape index: {}]  }
   0x1   :  { %v569_v0 = vld [vmem:[%s766_s1 + $0x38] sm:$0xff]  ;;  %v568_v1 = vld [vmem:[%s766_s1 + $0x30] sm:$0xff]  ;;  %v567_v2 = vld [vmem:[%s766_s1 + $0x28] sm:$0xff] }
   0x2   :  { %181 = vmatpush.bf16.msra.mxu0 %v569_v0  ;;  %625 = vmatpush.bf16.msra.mxu2 %v569_v0  ;;  %v566_v3 = vld [vmem:[%s766_s1 + $0x20] sm:$0xff]  ;;  %v565_v4 = vld [vmem:[%s766_s1 + $0x18] sm:$0xff]  ;;  %v564_v5 = vld [vmem:[%s766_s1 + $0x10] sm:$0xff] }
   0x3   :  { %v563_v6 = vld [vmem:[%s766_s1 + $0x8] sm:$0xff]  ;;  %v562_v7 = vld [vmem:[%s766_s1] sm:$0xff]  ;;  %v577_v12 = vld [vmem:[%s768_s2 + $0x38] sm:$0xff] }
   0x4   :  { %v554_v8 = vld [vmem:[%s767_s0] sm:$0xff]  ;;  %v555_v10 = vld [vmem:[%s767_s0 + $0x8] sm:$0xff]  ;;  %357 = vmatpush.bf16.msra.mxu1 %v577_v12  ;;  %v576_v13 = vld [vmem:[%s768_s2 + $0x30] sm:$0xff]  ;;  %633 = vmatpush.bf16.msra.mxu3 %v577_v12 }
   0x5   :  { %v558_v9 = vld [vmem:[%s767_s0 + $0x20] sm:$0xff]  ;;  %v559_v11 = vld [vmem:[%s767_s0 + $0x28] sm:$0xff]  ;;  %v556_v16 = vld [vmem:[%s767_s0 + $0x10] sm:$0xff] }
   0x6   :  { %182 = vmatpush.bf16.msra.mxu0 %v568_v1  ;;  %626 = vmatpush.bf16.msra.mxu2 %v568_v1  ;;  %v575_v14 = vld [vmem:[%s768_s2 + $0x28] sm:$0xff]  ;;  %v574_v15 = vld [vmem:[%s768_s2 + $0x20] sm:$0xff]  ;;  %v560_v17 = vld [vmem:[%s767_s0 + $0x30] sm:$0xff] }
   0x7   :  { %v573_v18 = vld [vmem:[%s768_s2 + $0x18] sm:$0xff]  ;;  %v572_v21 = vld [vmem:[%s768_s2 + $0x10] sm:$0xff]  ;;  %v571_v22 = vld [vmem:[%s768_s2 + $0x8] sm:$0xff] }
   0x8   :  { %358 = vmatpush.bf16.msra.mxu1 %v576_v13  ;;  %634 = vmatpush.bf16.msra.mxu3 %v576_v13  ;;  %v557_v19 = vld [vmem:[%s767_s0 + $0x18] sm:$0xff]  ;;  %v570_v23 = vld [vmem:[%s768_s2] sm:$0xff] }
   0x9   :  { %v561_v20 = vld [vmem:[%s767_s0 + $0x38] sm:$0xff]  ;;  %v641_v49 = vld [vmem:[%s769_s3] ss:$0 sm:$0xff] }
   0xa   :  { %183 = vmatpush.bf16.msra.mxu0 %v567_v2  ;;  %627 = vmatpush.bf16.msra.mxu2 %v567_v2 }
   0xc   :  { %359 = vmatpush.bf16.msra.mxu1 %v575_v14  ;;  %635 = vmatpush.bf16.msra.mxu3 %v575_v14 }
   0xe   :  { %184 = vmatpush.bf16.msra.mxu0 %v566_v3  ;;  %628 = vmatpush.bf16.msra.mxu2 %v566_v3 }
  0x10   :  { %360 = vmatpush.bf16.msra.mxu1 %v574_v15  ;;  %636 = vmatpush.bf16.msra.mxu3 %v574_v15 }
  0x12   :  { %185 = vmatpush.bf16.msra.mxu0 %v565_v4  ;;  %629 = vmatpush.bf16.msra.mxu2 %v565_v4 }
  0x14   :  { %361 = vmatpush.bf16.msra.mxu1 %v573_v18  ;;  %637 = vmatpush.bf16.msra.mxu3 %v573_v18 }
  0x16   :  { %186 = vmatpush.bf16.msra.mxu0 %v564_v5  ;;  %630 = vmatpush.bf16.msra.mxu2 %v564_v5 }
  0x18   :  { %362 = vmatpush.bf16.msra.mxu1 %v572_v21  ;;  %638 = vmatpush.bf16.msra.mxu3 %v572_v21 }
  0x1a   :  { %187 = vmatpush.bf16.msra.mxu0 %v563_v6  ;;  %631 = vmatpush.bf16.msra.mxu2 %v563_v6 }
  0x1c   :  { %363 = vmatpush.bf16.msra.mxu1 %v571_v22  ;;  %639 = vmatpush.bf16.msra.mxu3 %v571_v22 }
  0x1e   :  { %188 = vmatpush.bf16.msra.mxu0 %v562_v7  ;;  %632 = vmatpush.bf16.msra.mxu2 %v562_v7 }
  0x20   :  { %364 = vmatpush.bf16.msra.mxu1 %v570_v23  ;;  %640 = vmatpush.bf16.msra.mxu3 %v570_v23 }
  0x21   :  { %189 = vmatmul.bf16.vlgmr.msra.gmra.mxu0 %v554_v8  ;;  %209 = vmatmul.bf16.vlgmr.msra.gmra.mxu2 %v558_v9 }
  0x31   :  { %194 = vmatmul.bf16.gmra.mxu0 %v555_v10  ;;  %214 = vmatmul.bf16.gmra.mxu2 %v559_v11 }
  0x41   :  { %199 = vmatmul.bf16.gmra.mxu0 %v556_v16  ;;  %219 = vmatmul.bf16.gmra.mxu2 %v560_v17 }
  0x51   :  { %204 = vmatmul.bf16.gmra.mxu0 %v557_v19  ;;  %224 = vmatmul.bf16.gmra.mxu2 %v561_v20 }
  0x9e   :  { %v190_v24 = vpop.f32.mrf.mxu0 }
  0xa4   :  { %v210_v25 = vpop.f32.mrf.mxu2 }
  0xa6   :  { %v192_v26 = vpop.f32.mrf.mxu0 }
  0xa7   :  { %v281_v27 = vpack.c.bf16 %v192_v26, %v190_v24 }
  0xa9   :  { %365 = vmatmul.bf16.vlgmr.msra.gmra.mxu1 %v281_v27 }
  0xac   :  { %v212_v28 = vpop.f32.mrf.mxu2 }
  0xad   :  { %v285_v29 = vpack.c.bf16 %v212_v28, %v210_v25 }
  0xae   :  { %v195_v30 = vpop.f32.mrf.mxu0 }
  0xaf   :  { %385 = vmatmul.bf16.vlgmr.msra.gmra.mxu3 %v285_v29 }
  0xb4   :  { %v215_v31 = vpop.f32.mrf.mxu2 }
  0xb6   :  { %v197_v32 = vpop.f32.mrf.mxu0 }
  0xb7   :  { %v282_v33 = vpack.c.bf16 %v197_v32, %v195_v30 }
  0xb9   :  { %370 = vmatmul.bf16.gmra.mxu1 %v282_v33 }
  0xbc   :  { %v217_v34 = vpop.f32.mrf.mxu2 }
  0xbd   :  { %v286_v35 = vpack.c.bf16 %v217_v34, %v215_v31 }
  0xbe   :  { %v200_v36 = vpop.f32.mrf.mxu0 }
  0xbf   :  { %390 = vmatmul.bf16.gmra.mxu3 %v286_v35 }
  0xc4   :  { %v220_v37 = vpop.f32.mrf.mxu2 }
  0xc6   :  { %v202_v38 = vpop.f32.mrf.mxu0 }
  0xc7   :  { %v283_v39 = vpack.c.bf16 %v202_v38, %v200_v36 }
  0xc9   :  { %375 = vmatmul.bf16.gmra.mxu1 %v283_v39 }
  0xcc   :  { %v222_v40 = vpop.f32.mrf.mxu2 }
  0xcd   :  { %v287_v41 = vpack.c.bf16 %v222_v40, %v220_v37 }
  0xce   :  { %v205_v42 = vpop.f32.mrf.mxu0 }
  0xcf   :  { %395 = vmatmul.bf16.gmra.mxu3 %v287_v41 }
  0xd4   :  { %v225_v43 = vpop.f32.mrf.mxu2 }
  0xd6   :  { %v207_v44 = vpop.f32.mrf.mxu0 }
  0xd7   :  { %v284_v45 = vpack.c.bf16 %v207_v44, %v205_v42 }
  0xd9   :  { %380 = vmatmul.bf16.gmra.mxu1 %v284_v45 }
  0xdc   :  { %v227_v46 = vpop.f32.mrf.mxu2 }
  0xdd   :  { %v288_v47 = vpack.c.bf16 %v227_v46, %v225_v43 }
  0xdf   :  { %400 = vmatmul.bf16.gmra.mxu3 %v288_v47 }
 0x126   :  { %v366_v48 = vpop.f32.mrf.mxu1 }
 0x127   :  { %v367_v50 = vadd.f32 %v641_v49, %v366_v48 }
 0x129   :  { %v406_v53 = vmax.f32 %v367_v50, 0.0 }
 0x12e   :  { %v368_v51 = vpop.f32.mrf.mxu1 }
 0x12f   :  { %v369_v52 = vadd.f32 %v641_v49, %v368_v51 }
 0x131   :  { %v407_v54 = vmax.f32 %v369_v52, 0.0 }
 0x132   :  { %v386_v55 = vpop.f32.mrf.mxu3 }
 0x133   :  { %v581_v56 = vpack.c.bf16 %v407_v54, %v406_v53  ;;  %v387_v58 = vadd.f32 %v641_v49, %v386_v55 }
 0x135   :  { %582 = vst [vmem:[%s770_s4] sm:$0xff] %v581_v56   ;;  %v414_v61 = vmax.f32 %v387_v58, 0.0 }
 0x136   :  { %v371_v57 = vpop.f32.mrf.mxu1 }
 0x137   :  { %v372_v62 = vadd.f32 %v641_v49, %v371_v57 }
 0x139   :  { %v408_v3 = vmax.f32 %v372_v62, 0.0 }
 0x13a   :  { %v388_v59 = vpop.f32.mrf.mxu3 }
 0x13b   :  { %v389_v60 = vadd.f32 %v641_v49, %v388_v59 }
 0x13d   :  { %v415_v63 = vmax.f32 %v389_v60, 0.0 }
 0x13e   :  { %v373_v0 = vpop.f32.mrf.mxu1 }
 0x13f   :  { %v601_v1 = vpack.c.bf16 %v415_v63, %v414_v61  ;;  %v374_v2 = vadd.f32 %v641_v49, %v373_v0 }
 0x141   :  { %621 = vst [vmem:[%s770_s4 + $0x20] sm:$0xff] %v601_v1   ;;  %v409_v4 = vmax.f32 %v374_v2, 0.0 }
 0x142   :  { %v391_v5 = vpop.f32.mrf.mxu3 }
 0x143   :  { %v586_v6 = vpack.c.bf16 %v409_v4, %v408_v3  ;;  %v392_v8 = vadd.f32 %v641_v49, %v391_v5 }
 0x145   :  { %618 = vst [vmem:[%s770_s4 + $0x8] sm:$0xff] %v586_v6   ;;  %v416_v11 = vmax.f32 %v392_v8, 0.0 }
 0x146   :  { %v376_v7 = vpop.f32.mrf.mxu1 }
 0x147   :  { %v377_v12 = vadd.f32 %v641_v49, %v376_v7 }
 0x149   :  { %v410_v17 = vmax.f32 %v377_v12, 0.0 }
 0x14a   :  { %v393_v9 = vpop.f32.mrf.mxu3 }
 0x14b   :  { %v394_v10 = vadd.f32 %v641_v49, %v393_v9 }
 0x14d   :  { %v417_v13 = vmax.f32 %v394_v10, 0.0 }
 0x14e   :  { %v378_v14 = vpop.f32.mrf.mxu1 }
 0x14f   :  { %v606_v15 = vpack.c.bf16 %v417_v13, %v416_v11  ;;  %v379_v16 = vadd.f32 %v641_v49, %v378_v14 }
 0x151   :  { %622 = vst [vmem:[%s770_s4 + $0x28] sm:$0xff] %v606_v15   ;;  %v411_v18 = vmax.f32 %v379_v16, 0.0 }
 0x152   :  { %v396_v19 = vpop.f32.mrf.mxu3 }
 0x153   :  { %v591_v20 = vpack.c.bf16 %v411_v18, %v410_v17  ;;  %v397_v22 = vadd.f32 %v641_v49, %v396_v19 }
 0x155   :  { %619 = vst [vmem:[%s770_s4 + $0x10] sm:$0xff] %v591_v20   ;;  %v418_v25 = vmax.f32 %v397_v22, 0.0 }
 0x156   :  { %v381_v21 = vpop.f32.mrf.mxu1 }
 0x157   :  { %v382_v26 = vadd.f32 %v641_v49, %v381_v21 }
 0x159   :  { %v412_v31 = vmax.f32 %v382_v26, 0.0 }
 0x15a   :  { %v398_v23 = vpop.f32.mrf.mxu3 }
 0x15b   :  { %v399_v24 = vadd.f32 %v641_v49, %v398_v23 }
 0x15d   :  { %v419_v27 = vmax.f32 %v399_v24, 0.0 }
 0x15e   :  { %v383_v28 = vpop.f32.mrf.mxu1 }
 0x15f   :  { %v611_v29 = vpack.c.bf16 %v419_v27, %v418_v25  ;;  %v384_v30 = vadd.f32 %v641_v49, %v383_v28 }
 0x161   :  { %623 = vst [vmem:[%s770_s4 + $0x30] sm:$0xff] %v611_v29   ;;  %v413_v32 = vmax.f32 %v384_v30, 0.0 }
 0x162   :  { %v401_v33 = vpop.f32.mrf.mxu3 }
 0x163   :  { %v596_v34 = vpack.c.bf16 %v413_v32, %v412_v31  ;;  %v402_v35 = vadd.f32 %v641_v49, %v401_v33 }
 0x165   :  { %620 = vst [vmem:[%s770_s4 + $0x18] sm:$0xff] %v596_v34   ;;  %v420_v38 = vmax.f32 %v402_v35, 0.0 }
 0x16a   :  { %v403_v36 = vpop.f32.mrf.mxu3 }
 0x16b   :  { %v404_v37 = vadd.f32 %v641_v49, %v403_v36 }
 0x16d   :  { %v421_v39 = vmax.f32 %v404_v37, 0.0 }
 0x16f   :  { %v616_v40 = vpack.c.bf16 %v421_v39, %v420_v38 }
 0x171   :  { %624 = vst [vmem:[%s770_s4 + $0x38] sm:$0xff] %v616_v40  }

</bundles_post_ra>
